<compile_context>
chip_gen: v5e
topology: v5e:2x2
jax: 0.10.0
libtpu: 0.0.40
codegen_flags: <defaults>
</compile_context>

<pallas_src>
import functools

import jax
import jax.numpy as jnp
from jax.experimental import pallas as pl
from jax.experimental.pallas import tpu as pltpu

# ---- synthetic "penn" constants (small stand-ins for 1024 / 1440) ----------
WINDOW_SIZE = 256
PITCH_BINS = 256
HIDDEN = 128
SAMPLE_RATE = 8000     # model sample rate == input sample rate -> resample is identity

MAX_TF = 128           # full MXU M dimension


def _bf16_softmax_supported():
    """bf16 VPU/EUP paths exist on v6e and later; keep softmax f32 on v5e / unknown."""
    try:
        kind = jax.devices()[0].device_kind.lower()
    except Exception:
        return False
    return any(tag in kind for tag in ("v6", "v7", "7x"))


def _choose_tile(n_rows):
    """Frame-tile size: as close to 128 as possible, but keep >= 2 grid steps for small
    inputs so dimension_semantics=("parallel",) can shard across v7x's two TensorCores."""
    if n_rows >= 2 * MAX_TF:
        return MAX_TF
    tf = ((n_rows + 1) // 2 + 7) // 8 * 8        # ~ceil(n_rows/2), rounded up to 8
    return int(min(max(tf, 8), MAX_TF))


def _fcnf0_prob_kernel(frames_ref, w1_ref, b1_ref, w2_ref, b2_ref, out_ref,
                       *, bf16_softmax):
    # (TF, W) f32 frames; per-frame normalization stays in f32 (reference fidelity).
    x = frames_ref[...]
    mu = jnp.mean(x, axis=-1, keepdims=True)
    xc = x - mu
    var = jnp.mean(xc * xc, axis=-1, keepdims=True)
    # Padded rows are clamped duplicates of real frames; an all-constant frame gives
    # var=0 -> rsqrt(eps) but xc=0, so the row stays 0 (benign, do not "fix" into NaN).
    xn = xc * jax.lax.rsqrt(var + 1e-10)

    # Linear -> ReLU -> Linear: bf16 MXU operands, f32 accumulation.
    h = jnp.dot(xn.astype(jnp.bfloat16), w1_ref[...],
                preferred_element_type=jnp.float32) + b1_ref[...]
    h = jnp.maximum(h, 0.0)
    logits = jnp.dot(h.astype(jnp.bfloat16), w2_ref[...],
                     preferred_element_type=jnp.float32) + b2_ref[...]

    # softmax over pitch bins (out_format='prob').
    m = jnp.max(logits, axis=-1, keepdims=True)
    z = logits - m
    if bf16_softmax:
        # v6e/v7x: bf16 exp halves EUP pushes; sum/reciprocal stay f32 so rows still
        # normalize to 1 within the approx-reciprocal error.
        e = jnp.exp(z.astype(jnp.bfloat16)).astype(jnp.float32)
    else:
        e = jnp.exp(z)
    inv = pl.reciprocal(jnp.sum(e, axis=-1, keepdims=True), approx=True)
    out_ref[...] = (e * inv).astype(out_ref.dtype)


def _fcnf0_prob_pallas(frames, w1, b1, w2, b2, *, tf, bf16_softmax,
                       single_buffer_weights, out_dtype=jnp.float32):
    """frames: (f_pad, W) f32 with f_pad % tf == 0 -> probs: (f_pad, PITCH_BINS)."""
    f_pad, W = frames.shape
    assert f_pad % tf == 0

    def const_spec(shape):
        # Constant index_map -> fetched once, stays VMEM-resident across the grid.
        if single_buffer_weights:
            # Single buffer halves the VMEM these resident operands reserve.
            return pl.BlockSpec(shape, lambda i: (0, 0),
                                pipeline_mode=pl.Buffered(1))
        return pl.BlockSpec(shape, lambda i: (0, 0))

    kernel = functools.partial(_fcnf0_prob_kernel, bf16_softmax=bf16_softmax)
    return pl.pallas_call(
        kernel,
        out_shape=jax.ShapeDtypeStruct((f_pad, PITCH_BINS), out_dtype),
        grid_spec=pltpu.PrefetchScalarGridSpec(
            num_scalar_prefetch=0,
            grid=(f_pad // tf,),
            in_specs=[
                pl.BlockSpec((tf, W), lambda i: (i, 0)),
                const_spec((W, HIDDEN)),
                const_spec((1, HIDDEN)),
                const_spec((HIDDEN, PITCH_BINS)),
                const_spec((1, PITCH_BINS)),
            ],
            out_specs=pl.BlockSpec((tf, PITCH_BINS), lambda i: (i, 0)),
        ),
        compiler_params=pltpu.CompilerParams(
            dimension_semantics=("parallel",),
            vmem_limit_bytes=32 * 1024 * 1024),
    )(frames, w1, b1, w2, b2)


class Pitch:
    """JAX/Pallas port of diffsptk.Pitch(algorithm='fcnf0', out_format='prob')."""

    def __init__(self, frame_period, sample_rate, algorithm="fcnf0",
                 out_format="prob", voicing_threshold=0.5):
        assert frame_period >= 1 and sample_rate >= 1
        assert algorithm == "fcnf0"
        assert out_format == "prob"
        # TODO(synk): 'pitch'/'f0'/'log-f0' (penn.postprocess decoding) and the 'crepe'
        #             backend are not replicated.
        assert sample_rate == SAMPLE_RATE  # resample becomes the identity
        self.frame_period = frame_period
        self.hop = frame_period * SAMPLE_RATE // sample_rate
        self.bf16_softmax = _bf16_softmax_supported()
        self._single_buffer_weights = True   # falls back on first call if rejected

        # deterministic synthetic weights (in_features, out_features). Matmul weights are
        # stored bf16 (halves weight DMA, native MXU dtype); biases stay f32 (added into
        # the f32 accumulator).
        k1, k2, k3, k4 = jax.random.split(jax.random.PRNGKey(0), 4)
        self.w1 = (jax.random.normal(k1, (WINDOW_SIZE, HIDDEN), jnp.float32)
                   / jnp.sqrt(jnp.float32(WINDOW_SIZE))).astype(jnp.bfloat16)
        self.b1 = 0.01 * jax.random.normal(k2, (1, HIDDEN), jnp.float32)
        self.w2 = (jax.random.normal(k3, (HIDDEN, PITCH_BINS), jnp.float32)
                   / jnp.sqrt(jnp.float32(HIDDEN))).astype(jnp.bfloat16)
        self.b2 = 0.01 * jax.random.normal(k4, (1, PITCH_BINS), jnp.float32)

    @functools.partial(jax.jit, static_argnums=(0, 2))
    def _prob(self, x, single_buffer_weights):
        B, T = x.shape
        half = WINDOW_SIZE // 2
        n_frames = T // self.hop + 1
        F = B * n_frames
        tf = _choose_tile(F)
        f_pad = ((F + tf - 1) // tf) * tf

        # Reflect-pad the (tiny) signal, then materialize frames with ONE fused gather
        # that also performs the row padding via clamped indices: no separate jnp.pad /
        # dtype-cast passes over the ~3.2x-duplicated (F, W) frame matrix.
        xp = jnp.pad(x, ((0, 0), (half, half)), mode="reflect")     # (B, T + W)
        tp = T + 2 * half
        xp_flat = xp.reshape(-1)

        row = jnp.minimum(jnp.arange(f_pad), F - 1)                  # clamp padded rows
        b_idx = row // n_frames
        n_idx = row % n_frames
        start = b_idx * tp + n_idx * self.hop                        # (f_pad,)
        idx = start[:, None] + jnp.arange(WINDOW_SIZE)[None, :]      # (f_pad, W)
        frames = xp_flat[idx]                                        # (f_pad, W) f32

        probs = _fcnf0_prob_pallas(
            frames, self.w1, self.b1, self.w2, self.b2,
            tf=tf, bf16_softmax=self.bf16_softmax,
            single_buffer_weights=single_buffer_weights)
        # TODO(synk): the [:F] slice is one extra pass over the output; it disappears when
        #             F is already a multiple of the tile (typical for long audio).
        return probs[:F].reshape(B, n_frames, PITCH_BINS)

    def __call__(self, x):
        d = x.ndim
        if d == 1:
            x = x[None, :]
        assert x.ndim == 2
        if self._single_buffer_weights:
            try:
                y = self._prob(x, True)
            except Exception:
                # This Pallas build rejected single-buffered (Buffered(1)) weight specs;
                # rebuild with default double-buffering (correctness first).
                self._single_buffer_weights = False
                y = self._prob(x, False)
        else:
            y = self._prob(x, False)
        if d == 1:
            y = y[0]
        return y


if __name__ == "__main__":
    B, T = 2, 800
    frame_period = 80
    key = jax.random.PRNGKey(0)
    x = jax.random.normal(key, (B, T), dtype=jnp.float32)

    pitch = Pitch(frame_period, SAMPLE_RATE, algorithm="fcnf0", out_format="prob")
    y = pitch(x)
    y = jax.block_until_ready(y)

    n_frames = T // frame_period + 1
    assert y.shape == (B, n_frames, PITCH_BINS), y.shape
    assert bool(jnp.all(jnp.isfinite(y)))
    # probabilities are non-negative and rows sum to ~1
    # (tolerance covers the EUP approximate reciprocal and bf16 exp on v6e/v7x)
    assert bool(jnp.all(y >= 0.0))
    assert bool(jnp.allclose(jnp.sum(y, axis=-1), 1.0, atol=5e-3))
    print("KERNEL_OK")
</pallas_src>

<mosaic_0001>
module attributes {stable_mosaic.version = 11 : i64} {
  func.func @_fcnf0_prob_kernel(%arg0: i32, %arg1: memref<16x256xf32, #tpu.memory_space<vmem>>, %arg2: memref<256x128xbf16, #tpu.memory_space<vmem>>, %arg3: memref<1x128xf32, #tpu.memory_space<vmem>>, %arg4: memref<128x256xbf16, #tpu.memory_space<vmem>>, %arg5: memref<1x256xf32, #tpu.memory_space<vmem>>, %arg6: memref<16x256xf32, #tpu.memory_space<vmem>>) attributes {dimension_semantics = [#tpu.dimension_semantics<parallel>], iteration_bounds = array<i64: 2>, scalar_prefetch = 0 : i64, scratch_operands = 0 : i64, tpu.core_type = #tpu.core_type<tc>, window_params = [{transform_indices = @transform_0, window_bounds = array<i64: 16, 256>}, {pipeline_mode = #tpu.pipeline_mode<synchronous>, transform_indices = @transform_1, window_bounds = array<i64: 256, 128>}, {pipeline_mode = #tpu.pipeline_mode<synchronous>, transform_indices = @transform_2, window_bounds = array<i64: 1, 128>}, {pipeline_mode = #tpu.pipeline_mode<synchronous>, transform_indices = @transform_3, window_bounds = array<i64: 128, 256>}, {pipeline_mode = #tpu.pipeline_mode<synchronous>, transform_indices = @transform_4, window_bounds = array<i64: 1, 256>}, {transform_indices = @transform_5, window_bounds = array<i64: 16, 256>}]} {
    %c0 = arith.constant 0 : index
    %c0_0 = arith.constant 0 : index
    %0 = vector.load %arg1[%c0, %c0_0] : memref<16x256xf32, #tpu.memory_space<vmem>>, vector<16x256xf32>
    %cst = arith.constant dense<0.000000e+00> : vector<16xf32>
    %1 = vector.multi_reduction <add>, %0, %cst [1] : vector<16x256xf32> to vector<16xf32>
    %2 = vector.shape_cast %1 : vector<16xf32> to vector<16x1xf32>
    %cst_1 = arith.constant 2.560000e+02 : f32
    %3 = vector.broadcast %cst_1 : f32 to vector<16x1xf32>
    %4 = arith.divf %2, %3 : vector<16x1xf32>
    %5 = vector.broadcast %4 : vector<16x1xf32> to vector<16x256xf32>
    %6 = arith.subf %0, %5 : vector<16x256xf32>
    %7 = arith.mulf %6, %6 : vector<16x256xf32>
    %cst_2 = arith.constant dense<0.000000e+00> : vector<16xf32>
    %8 = vector.multi_reduction <add>, %7, %cst_2 [1] : vector<16x256xf32> to vector<16xf32>
    %9 = vector.shape_cast %8 : vector<16xf32> to vector<16x1xf32>
    %cst_3 = arith.constant 2.560000e+02 : f32
    %10 = vector.broadcast %cst_3 : f32 to vector<16x1xf32>
    %11 = arith.divf %9, %10 : vector<16x1xf32>
    %cst_4 = arith.constant 1.000000e-10 : f32
    %12 = vector.broadcast %cst_4 : f32 to vector<16x1xf32>
    %13 = arith.addf %11, %12 : vector<16x1xf32>
    %14 = math.rsqrt %13 : vector<16x1xf32>
    %15 = vector.broadcast %14 : vector<16x1xf32> to vector<16x256xf32>
    %16 = arith.mulf %6, %15 : vector<16x256xf32>
    %17 = arith.truncf %16 : vector<16x256xf32> to vector<16x256xbf16>
    %c0_5 = arith.constant 0 : index
    %c0_6 = arith.constant 0 : index
    %18 = vector.load %arg2[%c0_5, %c0_6] : memref<256x128xbf16, #tpu.memory_space<vmem>>, vector<256x128xbf16>
    %cst_7 = arith.constant dense<0.000000e+00> : vector<16x128xf32>
    %19 = tpu.matmul %17, %18, %cst_7 {dimension_numbers = #tpu.dot_dimension_numbers<[1], [0], [0], [1], [0, 0, 1, 1], [], []>} : vector<16x256xbf16>, vector<256x128xbf16>, vector<16x128xf32> -> vector<16x128xf32>
    %c0_8 = arith.constant 0 : index
    %c0_9 = arith.constant 0 : index
    %20 = vector.load %arg3[%c0_8, %c0_9] : memref<1x128xf32, #tpu.memory_space<vmem>>, vector<1x128xf32>
    %21 = vector.broadcast %20 : vector<1x128xf32> to vector<16x128xf32>
    %22 = arith.addf %19, %21 : vector<16x128xf32>
    %cst_10 = arith.constant 0.000000e+00 : f32
    %23 = vector.broadcast %cst_10 : f32 to vector<16x128xf32>
    %24 = arith.maximumf %22, %23 : vector<16x128xf32>
    %25 = arith.truncf %24 : vector<16x128xf32> to vector<16x128xbf16>
    %c0_11 = arith.constant 0 : index
    %c0_12 = arith.constant 0 : index
    %26 = vector.load %arg4[%c0_11, %c0_12] : memref<128x256xbf16, #tpu.memory_space<vmem>>, vector<128x256xbf16>
    %cst_13 = arith.constant dense<0.000000e+00> : vector<16x256xf32>
    %27 = tpu.matmul %25, %26, %cst_13 {dimension_numbers = #tpu.dot_dimension_numbers<[1], [0], [0], [1], [0, 0, 1, 1], [], []>} : vector<16x128xbf16>, vector<128x256xbf16>, vector<16x256xf32> -> vector<16x256xf32>
    %c0_14 = arith.constant 0 : index
    %c0_15 = arith.constant 0 : index
    %28 = vector.load %arg5[%c0_14, %c0_15] : memref<1x256xf32, #tpu.memory_space<vmem>>, vector<1x256xf32>
    %29 = vector.broadcast %28 : vector<1x256xf32> to vector<16x256xf32>
    %30 = arith.addf %27, %29 : vector<16x256xf32>
    %cst_16 = arith.constant dense<0xFF800000> : vector<16xf32>
    %31 = vector.multi_reduction <maximumf>, %30, %cst_16 [1] : vector<16x256xf32> to vector<16xf32>
    %32 = vector.shape_cast %31 : vector<16xf32> to vector<16x1xf32>
    %33 = vector.broadcast %32 : vector<16x1xf32> to vector<16x256xf32>
    %34 = arith.subf %30, %33 : vector<16x256xf32>
    %35 = math.exp %34 : vector<16x256xf32>
    %cst_17 = arith.constant dense<0.000000e+00> : vector<16xf32>
    %36 = vector.multi_reduction <add>, %35, %cst_17 [1] : vector<16x256xf32> to vector<16xf32>
    %37 = vector.shape_cast %36 : vector<16xf32> to vector<16x1xf32>
    %38 = tpu.reciprocal %37 {approx = true} : vector<16x1xf32> -> vector<16x1xf32>
    %39 = vector.broadcast %38 : vector<16x1xf32> to vector<16x256xf32>
    %40 = arith.mulf %35, %39 : vector<16x256xf32>
    %c0_18 = arith.constant 0 : index
    %c0_19 = arith.constant 0 : index
    %41 = vector.load %arg6[%c0_18, %c0_19] : memref<16x256xf32, #tpu.memory_space<vmem>>, vector<16x256xf32>
    tpu.vector_store %arg6[%c0_18, %c0_19], %40 {strides = array<i32>} : memref<16x256xf32, #tpu.memory_space<vmem>>, vector<16x256xf32>,
    return
  }
  func.func @transform_0(%arg0: i32) -> (i32, i32) {
    %c0_i32 = arith.constant 0 : i32
    %c0_i32_0 = arith.constant 0 : i32
    return %arg0, %c0_i32 : i32, i32
  }
  func.func @transform_1(%arg0: i32) -> (i32, i32) {
    %c0_i32 = arith.constant 0 : i32
    %c0_i32_0 = arith.constant 0 : i32
    %c0_i32_1 = arith.constant 0 : i32
    return %c0_i32, %c0_i32_0 : i32, i32
  }
  func.func @transform_2(%arg0: i32) -> (i32, i32) {
    %c0_i32 = arith.constant 0 : i32
    %c0_i32_0 = arith.constant 0 : i32
    %c0_i32_1 = arith.constant 0 : i32
    return %c0_i32, %c0_i32_0 : i32, i32
  }
  func.func @transform_3(%arg0: i32) -> (i32, i32) {
    %c0_i32 = arith.constant 0 : i32
    %c0_i32_0 = arith.constant 0 : i32
    %c0_i32_1 = arith.constant 0 : i32
    return %c0_i32, %c0_i32_0 : i32, i32
  }
  func.func @transform_4(%arg0: i32) -> (i32, i32) {
    %c0_i32 = arith.constant 0 : i32
    %c0_i32_0 = arith.constant 0 : i32
    %c0_i32_1 = arith.constant 0 : i32
    return %c0_i32, %c0_i32_0 : i32, i32
  }
  func.func @transform_5(%arg0: i32) -> (i32, i32) {
    %c0_i32 = arith.constant 0 : i32
    %c0_i32_0 = arith.constant 0 : i32
    return %arg0, %c0_i32 : i32, i32
  }
}

module attributes {stable_mosaic.version = 11 : i64} {
  func.func @_fcnf0_prob_kernel(%arg0: i32, %arg1: memref<16x256xf32, #tpu.memory_space<vmem>>, %arg2: memref<256x128xbf16, #tpu.memory_space<vmem>>, %arg3: memref<1x128xf32, #tpu.memory_space<vmem>>, %arg4: memref<128x256xbf16, #tpu.memory_space<vmem>>, %arg5: memref<1x256xf32, #tpu.memory_space<vmem>>, %arg6: memref<16x256xf32, #tpu.memory_space<vmem>>) attributes {dimension_semantics = [#tpu.dimension_semantics<parallel>], iteration_bounds = array<i64: 2>, scalar_prefetch = 0 : i64, scratch_operands = 0 : i64, tpu.core_type = #tpu.core_type<tc>, window_params = [{transform_indices = @transform_0, window_bounds = array<i64: 16, 256>}, {pipeline_mode = #tpu.pipeline_mode<synchronous>, transform_indices = @transform_1, window_bounds = array<i64: 256, 128>}, {pipeline_mode = #tpu.pipeline_mode<synchronous>, transform_indices = @transform_2, window_bounds = array<i64: 1, 128>}, {pipeline_mode = #tpu.pipeline_mode<synchronous>, transform_indices = @transform_3, window_bounds = array<i64: 128, 256>}, {pipeline_mode = #tpu.pipeline_mode<synchronous>, transform_indices = @transform_4, window_bounds = array<i64: 1, 256>}, {transform_indices = @transform_5, window_bounds = array<i64: 16, 256>}]} {
    %c0 = arith.constant 0 : index
    %c0_0 = arith.constant 0 : index
    %0 = vector.load %arg1[%c0, %c0_0] : memref<16x256xf32, #tpu.memory_space<vmem>>, vector<16x256xf32>
    %cst = arith.constant dense<0.000000e+00> : vector<16xf32>
    %1 = vector.multi_reduction <add>, %0, %cst [1] : vector<16x256xf32> to vector<16xf32>
    %2 = vector.shape_cast %1 : vector<16xf32> to vector<16x1xf32>
    %cst_1 = arith.constant 2.560000e+02 : f32
    %3 = vector.broadcast %cst_1 : f32 to vector<16x1xf32>
    %4 = arith.divf %2, %3 : vector<16x1xf32>
    %5 = vector.broadcast %4 : vector<16x1xf32> to vector<16x256xf32>
    %6 = arith.subf %0, %5 : vector<16x256xf32>
    %7 = arith.mulf %6, %6 : vector<16x256xf32>
    %cst_2 = arith.constant dense<0.000000e+00> : vector<16xf32>
    %8 = vector.multi_reduction <add>, %7, %cst_2 [1] : vector<16x256xf32> to vector<16xf32>
    %9 = vector.shape_cast %8 : vector<16xf32> to vector<16x1xf32>
    %cst_3 = arith.constant 2.560000e+02 : f32
    %10 = vector.broadcast %cst_3 : f32 to vector<16x1xf32>
    %11 = arith.divf %9, %10 : vector<16x1xf32>
    %cst_4 = arith.constant 1.000000e-10 : f32
    %12 = vector.broadcast %cst_4 : f32 to vector<16x1xf32>
    %13 = arith.addf %11, %12 : vector<16x1xf32>
    %14 = math.rsqrt %13 : vector<16x1xf32>
    %15 = vector.broadcast %14 : vector<16x1xf32> to vector<16x256xf32>
    %16 = arith.mulf %6, %15 : vector<16x256xf32>
    %17 = arith.truncf %16 : vector<16x256xf32> to vector<16x256xbf16>
    %c0_5 = arith.constant 0 : index
    %c0_6 = arith.constant 0 : index
    %18 = vector.load %arg2[%c0_5, %c0_6] : memref<256x128xbf16, #tpu.memory_space<vmem>>, vector<256x128xbf16>
    %cst_7 = arith.constant dense<0.000000e+00> : vector<16x128xf32>
    %19 = tpu.matmul %17, %18, %cst_7 {dimension_numbers = #tpu.dot_dimension_numbers<[1], [0], [0], [1], [0, 0, 1, 1], [], []>} : vector<16x256xbf16>, vector<256x128xbf16>, vector<16x128xf32> -> vector<16x128xf32>
    %c0_8 = arith.constant 0 : index
    %c0_9 = arith.constant 0 : index
    %20 = vector.load %arg3[%c0_8, %c0_9] : memref<1x128xf32, #tpu.memory_space<vmem>>, vector<1x128xf32>
    %21 = vector.broadcast %20 : vector<1x128xf32> to vector<16x128xf32>
    %22 = arith.addf %19, %21 : vector<16x128xf32>
    %cst_10 = arith.constant 0.000000e+00 : f32
    %23 = vector.broadcast %cst_10 : f32 to vector<16x128xf32>
    %24 = arith.maximumf %22, %23 : vector<16x128xf32>
    %25 = arith.truncf %24 : vector<16x128xf32> to vector<16x128xbf16>
    %c0_11 = arith.constant 0 : index
    %c0_12 = arith.constant 0 : index
    %26 = vector.load %arg4[%c0_11, %c0_12] : memref<128x256xbf16, #tpu.memory_space<vmem>>, vector<128x256xbf16>
    %cst_13 = arith.constant dense<0.000000e+00> : vector<16x256xf32>
    %27 = tpu.matmul %25, %26, %cst_13 {dimension_numbers = #tpu.dot_dimension_numbers<[1], [0], [0], [1], [0, 0, 1, 1], [], []>} : vector<16x128xbf16>, vector<128x256xbf16>, vector<16x256xf32> -> vector<16x256xf32>
    %c0_14 = arith.constant 0 : index
    %c0_15 = arith.constant 0 : index
    %28 = vector.load %arg5[%c0_14, %c0_15] : memref<1x256xf32, #tpu.memory_space<vmem>>, vector<1x256xf32>
    %29 = vector.broadcast %28 : vector<1x256xf32> to vector<16x256xf32>
    %30 = arith.addf %27, %29 : vector<16x256xf32>
    %cst_16 = arith.constant dense<0xFF800000> : vector<16xf32>
    %31 = vector.multi_reduction <maximumf>, %30, %cst_16 [1] : vector<16x256xf32> to vector<16xf32>
    %32 = vector.shape_cast %31 : vector<16xf32> to vector<16x1xf32>
    %33 = vector.broadcast %32 : vector<16x1xf32> to vector<16x256xf32>
    %34 = arith.subf %30, %33 : vector<16x256xf32>
    %35 = math.exp %34 : vector<16x256xf32>
    %cst_17 = arith.constant dense<0.000000e+00> : vector<16xf32>
    %36 = vector.multi_reduction <add>, %35, %cst_17 [1] : vector<16x256xf32> to vector<16xf32>
    %37 = vector.shape_cast %36 : vector<16xf32> to vector<16x1xf32>
    %38 = tpu.reciprocal %37 {approx = true} : vector<16x1xf32> -> vector<16x1xf32>
    %39 = vector.broadcast %38 : vector<16x1xf32> to vector<16x256xf32>
    %40 = arith.mulf %35, %39 : vector<16x256xf32>
    %c0_18 = arith.constant 0 : index
    %c0_19 = arith.constant 0 : index
    %41 = vector.load %arg6[%c0_18, %c0_19] : memref<16x256xf32, #tpu.memory_space<vmem>>, vector<16x256xf32>
    tpu.vector_store %arg6[%c0_18, %c0_19], %40 {strides = array<i32>} : memref<16x256xf32, #tpu.memory_space<vmem>>, vector<16x256xf32>,
    return
  }
  func.func @transform_0(%arg0: i32) -> (i32, i32) {
    %c0_i32 = arith.constant 0 : i32
    %c0_i32_0 = arith.constant 0 : i32
    return %arg0, %c0_i32 : i32, i32
  }
  func.func @transform_1(%arg0: i32) -> (i32, i32) {
    %c0_i32 = arith.constant 0 : i32
    %c0_i32_0 = arith.constant 0 : i32
    %c0_i32_1 = arith.constant 0 : i32
    return %c0_i32, %c0_i32_0 : i32, i32
  }
  func.func @transform_2(%arg0: i32) -> (i32, i32) {
    %c0_i32 = arith.constant 0 : i32
    %c0_i32_0 = arith.constant 0 : i32
    %c0_i32_1 = arith.constant 0 : i32
    return %c0_i32, %c0_i32_0 : i32, i32
  }
  func.func @transform_3(%arg0: i32) -> (i32, i32) {
    %c0_i32 = arith.constant 0 : i32
    %c0_i32_0 = arith.constant 0 : i32
    %c0_i32_1 = arith.constant 0 : i32
    return %c0_i32, %c0_i32_0 : i32, i32
  }
  func.func @transform_4(%arg0: i32) -> (i32, i32) {
    %c0_i32 = arith.constant 0 : i32
    %c0_i32_0 = arith.constant 0 : i32
    %c0_i32_1 = arith.constant 0 : i32
    return %c0_i32, %c0_i32_0 : i32, i32
  }
  func.func @transform_5(%arg0: i32) -> (i32, i32) {
    %c0_i32 = arith.constant 0 : i32
    %c0_i32_0 = arith.constant 0 : i32
    return %arg0, %c0_i32 : i32, i32
  }
}

</mosaic_0001>

<bundles_post_ra>
// kernel: _prob.1
= control target key start
LH: loop header
LB: loop body
LE: loop exit
PB: predicated region body
PF: predicated region fallthrough
CT: control target
= control target key end

     0   :  { %s923_s18 = smov 0   ;;  %s1123_s0 = inlined_call_operand.vmem [shape: f32[32,256], index: 0, kind: input, shape index: {}]   ;;  %s1124_s1 = inlined_call_operand.vmem [shape: bf16[256,128], index: 1, kind: input, shape index: {}]   ;;  %s1125_s2 = inlined_call_operand.vmem [shape: f32[1,128], index: 2, kind: input, shape index: {}]   ;;  %s1126_s3 = inlined_call_operand.vmem [shape: bf16[128,256], index: 3, kind: input, shape index: {}]   ;;  %s1127_s4 = inlined_call_operand.vmem [shape: f32[1,256], index: 4, kind: input, shape index: {}]   ;;  %s1128_s5 = inlined_call_operand.vmem [shape: f32[32,256], index: 5, kind: output, shape index: {}]  }
   0x1 LB: > { %s681_s19 = sadd.s32 4294967295, %s890_s18   ;;  %p685_p0 = scmp.ge.s32.totalorder %s890_s18, 1  ;;  %s890_s18 = sphi %s923_s18, %s15_s18  }
   0x2   : > { %p189_p1 = scmp.lt.s32.totalorder %s890_s18, 3 }
   0x4   : > { %p190_p2 = pnand %p685_p0, %p189_p1 }
   0x5   : > { %s686_s20 = sshll.u32 (!%p190_p2), %s681_s19, 1 }
   0x6   : > { %193 = sbr.rel (%p190_p2) target bundleno = 834 (0x342), region = 40  ;;  %p220_p3 = scmp.lt.s32.totalorder (!%p190_p2), %s686_s20, 3 }
   0xb   : > { %s1130_s20 = smov (!%p220_p3, %s686_s20), 3  ;;  %v892_v6 = vmov 256.0   ;;  %v831_v27 = vld [vmem:[%s1124_s1 + $0x38] sm:$0xff]  ;;  %v830_v29 = vld [vmem:[%s1124_s1 + $0x30] sm:$0xff]  ;;  %v829_v31 = vld [vmem:[%s1124_s1 + $0x28] sm:$0xff] }
   0xc   : > { %s822_s21 = sshll.u32 %s1130_s20, 4  ;;  %866 = vrcp.f32 %v892_v6  ;;  %v839_v28 = vld [vmem:[%s1124_s1 + $0x78] sm:$0xff]  ;;  %428 = vmatpush.bf16.msra.mxu0 %v831_v27  ;;  %v838_v30 = vld [vmem:[%s1124_s1 + $0x70] sm:$0xff]  ;;  %v837_v32 = vld [vmem:[%s1124_s1 + $0x68] sm:$0xff] }
   0xd   : > { %s224_s24 = scalar_lea.vmem %s1123_s0, %s822_s21  ;;  %442 = vmatpush.bf16.msra.mxu1 %v839_v28  ;;  %v828_v33 = vld [vmem:[%s1124_s1 + $0x20] sm:$0xff]  ;;  %v827_v35 = vld [vmem:[%s1124_s1 + $0x18] sm:$0xff]  ;;  %v826_v37 = vld [vmem:[%s1124_s1 + $0x10] sm:$0xff]  ;;  %s231_s14 = scalar_lea.vmem %s1128_s5, %s822_s21 }
   0xe   : > { %v233_v0 = vld [vmem:[%s224_s24] sm:$0xff]  ;;  %v234_v1 = vld [vmem:[%s224_s24 + $0x8] sm:$0xff]  ;;  %v235_v3 = vld [vmem:[%s224_s24 + $0x10] sm:$0xff] }
   0xf   : > { %v237_v2 = vadd.f32 %v234_v1, %v233_v0  ;;  %v236_v4 = vld [vmem:[%s224_s24 + $0x18] sm:$0xff]  ;;  %v836_v34 = vld [vmem:[%s1124_s1 + $0x60] sm:$0xff]  ;;  %v834_v38 = vld [vmem:[%s1124_s1 + $0x50] sm:$0xff] }
  0x10   : > { %v240_v5 = vadd.f32 %v236_v4, %v235_v3  ;;  %429 = vmatpush.bf16.msra.mxu0 %v830_v29  ;;  %v835_v36 = vld [vmem:[%s1124_s1 + $0x58] sm:$0xff]  ;;  %v825_v39 = vld [vmem:[%s1124_s1 + $0x8] sm:$0xff]  ;;  %v824_v41 = vld [vmem:[%s1124_s1] sm:$0xff] }
  0x11   : > { %238 = vadd.xlane.f32.xlu0 %v237_v2  ;;  %443 = vmatpush.bf16.msra.mxu1 %v838_v30  ;;  %v833_v40 = vld [vmem:[%s1124_s1 + $0x48] sm:$0xff]  ;;  %v832_v42 = vld [vmem:[%s1124_s1 + $0x40] sm:$0xff]  ;;  %v814_v46 = vld [vmem:[%s1126_s3 + $0x70] sm:$0xf] }
  0x12   : > { %v867_v7 = vpop.eup %866  ;;  %v855_v47 = vld [vmem:[%s1126_s3 + $0x74] sm:$0xf0]  ;;  %v854_v49 = vld [vmem:[%s1126_s3 + $0x74] sm:$0xf]  ;;  %v816_v50 = vld [vmem:[%s1126_s3 + $0x78] sm:$0xf0] }
  0x13   : > { %v244_v8 = vmul.f32 256.0, %v867_v7  ;;  %vm248_vm0 = vweird.f32 %v867_v7  ;;  %v815_v48 = vor.u32 %v855_v47, %v814_v46  ;;  %v806_v51 = vld [vmem:[%s1126_s3 + $0x60] sm:$0xf]  ;;  %v819_v52 = vor.u32 %v854_v49, %v816_v50  ;;  %v853_v53 = vld [vmem:[%s1126_s3 + $0x64] sm:$0xf0] }
  0x14   : > { %430 = vmatpush.bf16.msra.mxu0 %v829_v31  ;;  %v852_v54 = vld [vmem:[%s1126_s3 + $0x64] sm:$0xf]  ;;  %v808_v55 = vld [vmem:[%s1126_s3 + $0x68] sm:$0xf0]  ;;  %v807_v56 = vor.u32 %v853_v53, %v806_v51  ;;  %v798_v58 = vld [vmem:[%s1126_s3 + $0x50] sm:$0xf] }
  0x15   : > { %v245_v9 = vsub.f32 1.0, %v244_v8  ;;  %444 = vmatpush.bf16.msra.mxu1 %v837_v32  ;;  %561 = vmatpush.bf16.msra.mxu2 %v815_v48  ;;  %v811_v57 = vor.u32 %v852_v54, %v808_v55  ;;  %v851_v59 = vld [vmem:[%s1126_s3 + $0x54] sm:$0xf0]  ;;  %v850_v61 = vld [vmem:[%s1126_s3 + $0x54] sm:$0xf] }
  0x16   : > { %575 = vmatpush.bf16.msra.mxu3 %v819_v52  ;;  %v800_v62 = vld [vmem:[%s1126_s3 + $0x58] sm:$0xf0]  ;;  %v792_v8 = vld [vmem:[%s1126_s3 + $0x48] sm:$0xf0]  ;;  %v758_v47 = vld [vmem:[%s1126_s3] sm:$0xf] }
  0x17   : > { %v246_v10 = vmul.f32 %v867_v7, %v245_v9  ;;  %v841_v48 = vld [vmem:[%s1126_s3 + $0x4] sm:$0xf0]  ;;  %v840_v49 = vld [vmem:[%s1126_s3 + $0x4] sm:$0xf]  ;;  %v760_v51 = vld [vmem:[%s1126_s3 + $0x8] sm:$0xf0] }
  0x18   : > { %431 = vmatpush.bf16.msra.mxu0 %v828_v33  ;;  %v782_v33 = vld [vmem:[%s1126_s3 + $0x30] sm:$0xf]  ;;  %v759_v50 = vor.u32 %v841_v48, %v758_v47  ;;  %v763_v52 = vor.u32 %v840_v49, %v760_v51  ;;  %v865_v55 = vld [vmem:[%s1125_s2] ss:$0 sm:$0xff] }
  0x19   : > { %241 = vadd.xlane.f32.xlu0 %v240_v5  ;;  %v247_v11 = vadd.f32 %v867_v7, %v246_v10  ;;  %445 = vmatpush.bf16.msra.mxu1 %v836_v34  ;;  %v849_v5 = vld [vmem:[%s1126_s3 + $0x44] sm:$0xf0]  ;;  %v847_v34 = vld [vmem:[%s1126_s3 + $0x34] sm:$0xf0] }
  0x1a   : > { %562 = vmatpush.bf16.msra.mxu2 %v807_v56  ;;  %576 = vmatpush.bf16.msra.mxu3 %v811_v57 }
  0x1b   : > { %v939_v12 = vsel %vm248_vm0, %v867_v7, %v247_v11  ;;  %v848_v7 = vld [vmem:[%s1126_s3 + $0x44] sm:$0xf] }
  0x1c   : > { %432 = vmatpush.bf16.msra.mxu0 %v827_v35  ;;  %v795_v11 = vor.u32 %v848_v7, %v792_v8  ;;  %v774_v35 = vld [vmem:[%s1126_s3 + $0x20] sm:$0xf] }
  0x1d   : > { %446 = vmatpush.bf16.msra.mxu1 %v835_v36  ;;  %v845_v36 = vld [vmem:[%s1126_s3 + $0x24] sm:$0xf0] }
  0x20   : > { %433 = vmatpush.bf16.msra.mxu0 %v826_v37  ;;  %v844_v37 = vld [vmem:[%s1126_s3 + $0x24] sm:$0xf] }
  0x21   : > { %447 = vmatpush.bf16.msra.mxu1 %v834_v38  ;;  %v775_v38 = vor.u32 %v845_v36, %v774_v35 }
  0x24   : > { %434 = vmatpush.bf16.msra.mxu0 %v825_v39  ;;  %v776_v39 = vld [vmem:[%s1126_s3 + $0x28] sm:$0xf0] }
  0x25   : > { %448 = vmatpush.bf16.msra.mxu1 %v833_v40  ;;  %v779_v40 = vor.u32 %v844_v37, %v776_v39 }
  0x28   : > { %435 = vmatpush.bf16.msra.mxu0 %v824_v41  ;;  %v766_v41 = vld [vmem:[%s1126_s3 + $0x10] sm:$0xf] }
  0x29   : > { %449 = vmatpush.bf16.msra.mxu1 %v832_v42  ;;  %v843_v42 = vld [vmem:[%s1126_s3 + $0x14] sm:$0xf0] }
  0x84   : > { %v239_v13 = vpop.xlane.xlu0 %238 }
  0x85   : > { %v250_v14 = vmul.f32 %v939_v12, %v239_v13 }
  0x87   : > { %v942_v15 = vsub.f32 %v233_v0, %v250_v14  ;;  %v944_v16 = vsub.f32 %v234_v1, %v250_v14  ;;  %v799_v0 = vor.u32 %v851_v59, %v798_v58 }
  0x89   : > { %v256_v17 = vmul.f32 %v942_v15, %v942_v15  ;;  %v257_v18 = vmul.f32 %v944_v16, %v944_v16  ;;  %563 = vmatpush.bf16.msra.mxu2 %v799_v0 }
  0x8b   : > { %v260_v19 = vadd.f32 %v257_v18, %v256_v17 }
  0x8c   : > { %v242_v20 = vpop.xlane.xlu0 %241 }
  0x8d   : > { %v251_v21 = vmul.f32 %v939_v12, %v242_v20  ;;  %261 = vadd.xlane.f32.xlu1 %v260_v19 }
  0x8f   : > { %v951_v22 = vsub.f32 %v235_v3, %v251_v21  ;;  %v953_v23 = vsub.f32 %v236_v4, %v251_v21  ;;  %v803_v3 = vor.u32 %v850_v61, %v800_v62  ;;  %v790_v4 = vld [vmem:[%s1126_s3 + $0x40] sm:$0xf] }
  0x90   : > { %v791_v10 = vor.u32 %v849_v5, %v790_v4 }
  0x91   : > { %v258_v24 = vmul.f32 %v951_v22, %v951_v22  ;;  %v259_v25 = vmul.f32 %v953_v23, %v953_v23  ;;  %577 = vmatpush.bf16.msra.mxu3 %v803_v3 }
  0x92   : > { %564 = vmatpush.bf16.msra.mxu2 %v791_v10 }
  0x93   : > { %v263_v26 = vadd.f32 %v259_v25, %v258_v24 }
  0x95   : > { %264 = vadd.xlane.f32.xlu1 %v263_v26  ;;  %578 = vmatpush.bf16.msra.mxu3 %v795_v11 }
 0x100   : > { %v262_v43 = vpop.xlane.xlu1 %261 }
 0x101   : > { %v266_v44 = vmul.f32 %v262_v43, %v939_v12  ;;  %v842_v43 = vld [vmem:[%s1126_s3 + $0x14] sm:$0xf] }
 0x103   : > { %v268_v45 = vadd.f32 1e-10, %v266_v44  ;;  %v767_v44 = vor.u32 %v843_v42, %v766_v41 }
 0x105   : > { %868 = vrsqrt.f32 %v268_v45  ;;  %vm276_vm2 = vweird.f32 %v268_v45 }
 0x108   : > { %v265_v60 = vpop.xlane.xlu1 %264 }
 0x109   : > { %v267_v63 = vmul.f32 %v265_v60, %v939_v12 }
 0x10b   : > { %v869_v1 = vpop.eup %868  ;;  %v269_v2 = vadd.f32 1e-10, %v267_v63 }
 0x10c   : > { %v271_v6 = vmul.f32 %v869_v1, %v268_v45  ;;  %vm277_vm1 = vweird.f32 %v869_v1  ;;  %v768_v45 = vld [vmem:[%s1126_s3 + $0x18] sm:$0xf0] }
 0x10d   : > { %870 = vrsqrt.f32 %v269_v2  ;;  %vm278_vm4 = vmor %vm276_vm2, %vm277_vm1  ;;  %vm286_vm5 = vweird.f32 %v269_v2  ;;  %v771_v46 = vor.u32 %v842_v43, %v768_v45 }
 0x10e   : > { %v272_v9 = vmul.f32 %v869_v1, %v271_v6 }
 0x110   : > { %v273_v12 = vmul.f32 0.5, %v272_v9 }
 0x112   : > { %v274_v14 = vsub.f32 1.5, %v273_v12 }
 0x113   : > { %v871_v13 = vpop.eup %870 }
 0x114   : > { %v281_v17 = vmul.f32 %v871_v13, %v269_v2  ;;  %v275_v20 = vmul.f32 %v869_v1, %v274_v14  ;;  %vm287_vm3 = vweird.f32 %v871_v13 }
 0x115   : > { %vm288_vm6 = vmor %vm286_vm5, %vm287_vm3 }
 0x116   : > { %v282_v18 = vmul.f32 %v871_v13, %v281_v17  ;;  %v279_v24 = vsel %vm278_vm4, %v869_v1, %v275_v20  ;;  %v475_v1 = vld [vmem:[%s1127_s4] sm:$0x3] }
 0x117   : > { %v290_v27 = vmul.f32 %v279_v24, %v942_v15  ;;  %v291_v29 = vmul.f32 %v279_v24, %v944_v16  ;;  %v846_v15 = vld [vmem:[%s1126_s3 + $0x34] sm:$0xf]  ;;  %v784_v16 = vld [vmem:[%s1126_s3 + $0x38] sm:$0xf0]  ;;  %v477_v2 = vperm.slane %v475_v1, 0  ;;  %v478_v3 = vperm.slane %v475_v1, 1 }
 0x118   : > { %v283_v19 = vmul.f32 0.5, %v282_v18 }
 0x11a   : > { %v284_v21 = vsub.f32 1.5, %v283_v19 }
 0x11c   : > { %v285_v25 = vmul.f32 %v871_v13, %v284_v21 }
 0x11e   : > { %v289_v26 = vsel %vm288_vm6, %v871_v13, %v285_v25 }
 0x11f   : > { %v292_v28 = vmul.f32 %v289_v26, %v951_v22  ;;  %v293_v30 = vmul.f32 %v289_v26, %v953_v23  ;;  %v783_v22 = vor.u32 %v847_v34, %v782_v33  ;;  %v787_v23 = vor.u32 %v846_v15, %v784_v16 }
 0x121   : > { %v294_v31 = vpack.c.bf16 %v292_v28, %v290_v27  ;;  %v295_v32 = vpack.c.bf16 %v293_v30, %v291_v29  ;;  %565 = vmatpush.bf16.msra.mxu2 %v783_v22  ;;  %579 = vmatpush.bf16.msra.mxu3 %v787_v23 }
 0x123   : > { %436 = vmatmul.bf16.vlgmr.msra.gmra.mxu0 %v294_v31  ;;  %450 = vmatmul.bf16.vlgmr.msra.gmra.mxu1 %v295_v32 }
 0x125   : > { %566 = vmatpush.bf16.msra.mxu2 %v775_v38  ;;  %580 = vmatpush.bf16.msra.mxu3 %v779_v40 }
 0x129   : > { %567 = vmatpush.bf16.msra.mxu2 %v767_v44  ;;  %581 = vmatpush.bf16.msra.mxu3 %v771_v46 }
 0x12d   : > { %568 = vmatpush.bf16.msra.mxu2 %v759_v50  ;;  %582 = vmatpush.bf16.msra.mxu3 %v763_v52 }
 0x1a0   : > { %v437_v53 = vpop.f32.mrf.mxu0  ;;  %v451_v54 = vpop.f32.mrf.mxu1 }
 0x1a1   : > { %v438_v56 = vadd.f32 %v865_v55, %v437_v53 }
 0x1a3   : > { %v452_v58 = vadd.f32 %v451_v54, %v438_v56 }
 0x1a5   : > { %v456_v62 = vmax.f32 %v452_v58, 0.0 }
 0x1a8   : > { %v439_v57 = vpop.f32.mrf.mxu0  ;;  %v453_v60 = vpop.f32.mrf.mxu1 }
 0x1a9   : > { %v440_v59 = vadd.f32 %v865_v55, %v439_v57 }
 0x1ab   : > { %v454_v61 = vadd.f32 %v453_v60, %v440_v59 }
 0x1ad   : > { %v457_v63 = vmax.f32 %v454_v61, 0.0 }
 0x1af   : > { %v458_v0 = vpack.c.bf16 %v457_v63, %v456_v62 }
 0x1b1   : > { %569 = vmatmul.bf16.vlgmr.msra.gmra.mxu2 %v458_v0  ;;  %583 = vmatmul.bf16.vlgmr.msra.gmra.mxu3 %v458_v0 }
 0x234   : > { %v570_v4 = vpop.f32.mrf.mxu2  ;;  %v584_v5 = vpop.f32.mrf.mxu3 }
 0x235   : > { %v571_v6 = vadd.f32 %v570_v4, %v477_v2  ;;  %v585_v7 = vadd.f32 %v584_v5, %v478_v3 }
 0x237   : > { %v589_v8 = vmax.f32 %v571_v6, %v585_v7 }
 0x239   : > { %590 = vmax.xlane.f32.xlu2 %v589_v8 }
 0x23c   : > { %v572_v9 = vpop.f32.mrf.mxu2  ;;  %v586_v10 = vpop.f32.mrf.mxu3 }
 0x23d   : > { %v573_v11 = vadd.f32 %v572_v9, %v477_v2  ;;  %v587_v12 = vadd.f32 %v586_v10, %v478_v3 }
 0x23f   : > { %v592_v13 = vmax.f32 %v573_v11, %v587_v12 }
 0x241   : > { %593 = vmax.xlane.f32.xlu2 %v592_v13 }
 0x2ac   : > { %v591_v14 = vpop.xlane.xlu2 %590 }
 0x2ad   : > { %v595_v17 = vsub.f32 %v571_v6, %v591_v14  ;;  %v596_v18 = vsub.f32 %v585_v7, %v591_v14 }
 0x2af   : > { %v599_v19 = vmul.f32 1.442695, %v595_v17  ;;  %v601_v20 = vmul.f32 1.442695, %v596_v18 }
 0x2b1   : > { %872 = vpow2.f32 %v599_v19 }
 0x2b2   : > { %874 = vpow2.f32 %v601_v20 }
 0x2b4   : > { %v594_v21 = vpop.xlane.xlu2 %593 }
 0x2b5   : > { %v597_v24 = vsub.f32 %v573_v11, %v594_v21  ;;  %v598_v25 = vsub.f32 %v587_v12, %v594_v21 }
 0x2b7   : > { %v873_v26 = vpop.eup %872  ;;  %v603_v27 = vmul.f32 1.442695, %v597_v24  ;;  %v605_v28 = vmul.f32 1.442695, %v598_v25 }
 0x2b8   : > { %v875_v29 = vpop.eup %874 }
 0x2b9   : > { %876 = vpow2.f32 %v603_v27  ;;  %v607_v30 = vadd.f32 %v875_v29, %v873_v26 }
 0x2ba   : > { %878 = vpow2.f32 %v605_v28 }
 0x2bb   : > { %608 = vadd.xlane.f32.xlu0 %v607_v30 }
 0x2bf   : > { %v877_v31 = vpop.eup %876 }
 0x2c0   : > { %v879_v32 = vpop.eup %878 }
 0x2c1   : > { %v610_v33 = vadd.f32 %v879_v32, %v877_v31 }
 0x2c3   : > { %611 = vadd.xlane.f32.xlu1 %v610_v33 }
 0x32e   : > { %v609_v34 = vpop.xlane.xlu0 %608 }
 0x32f   : > { %880 = vrcp.f32 %v609_v34 }
 0x335   : > { %v881_v15 = vpop.eup %880 }
 0x336   : > { %v615_v22 = vmul.f32 %v881_v15, %v873_v26  ;;  %v616_v16 = vmul.f32 %v881_v15, %v875_v29  ;;  %v612_v23 = vpop.xlane.xlu1 %611 }
 0x337   : > { %882 = vrcp.f32 %v612_v23 }
 0x338   : > { %619 = vst [vmem:[%s231_s14] sm:$0xff] %v615_v22 }
 0x339   : > { %620 = vst [vmem:[%s231_s14 + $0x8] sm:$0xff] %v616_v16 }
 0x33d   : > { %v883_v35 = vpop.eup %882 }
 0x33e   : > { %v617_v36 = vmul.f32 %v883_v35, %v877_v31  ;;  %v618_v37 = vmul.f32 %v883_v35, %v879_v32 }
 0x340   : > { %621 = vst [vmem:[%s231_s14 + $0x10] sm:$0xff] %v617_v36 }
 0x341   : > { %622 = vst [vmem:[%s231_s14 + $0x18] sm:$0xff] %v618_v37 }
 0x342 PF: > { %s15_s18 = sadd.s32 1, %s890_s18  }
 0x343   : > { %p12_p4 = scmp.ge.s32.totalorder %s15_s18, 4  }
 0x345   :  { %14 = sbr.rel (!%p12_p4) target bundleno = 1 (0x1), region = 70 }

// kernel: _prob.1
= control target key start
LH: loop header
LB: loop body
LE: loop exit
PB: predicated region body
PF: predicated region fallthrough
CT: control target
= control target key end

     0   :  { %s923_s18 = smov 0   ;;  %s1123_s0 = inlined_call_operand.vmem [shape: f32[32,256], index: 0, kind: input, shape index: {}]   ;;  %s1124_s1 = inlined_call_operand.vmem [shape: bf16[256,128], index: 1, kind: input, shape index: {}]   ;;  %s1125_s2 = inlined_call_operand.vmem [shape: f32[1,128], index: 2, kind: input, shape index: {}]   ;;  %s1126_s3 = inlined_call_operand.vmem [shape: bf16[128,256], index: 3, kind: input, shape index: {}]   ;;  %s1127_s4 = inlined_call_operand.vmem [shape: f32[1,256], index: 4, kind: input, shape index: {}]   ;;  %s1128_s5 = inlined_call_operand.vmem [shape: f32[32,256], index: 5, kind: output, shape index: {}]  }
   0x1 LB: > { %s681_s19 = sadd.s32 4294967295, %s890_s18   ;;  %p685_p0 = scmp.ge.s32.totalorder %s890_s18, 1  ;;  %s890_s18 = sphi %s923_s18, %s15_s18  }
   0x2   : > { %p189_p1 = scmp.lt.s32.totalorder %s890_s18, 3 }
   0x4   : > { %p190_p2 = pnand %p685_p0, %p189_p1 }
   0x5   : > { %s686_s20 = sshll.u32 (!%p190_p2), %s681_s19, 1 }
   0x6   : > { %193 = sbr.rel (%p190_p2) target bundleno = 834 (0x342), region = 40  ;;  %p220_p3 = scmp.lt.s32.totalorder (!%p190_p2), %s686_s20, 3 }
   0xb   : > { %s1130_s20 = smov (!%p220_p3, %s686_s20), 3  ;;  %v892_v6 = vmov 256.0   ;;  %v831_v27 = vld [vmem:[%s1124_s1 + $0x38] sm:$0xff]  ;;  %v830_v29 = vld [vmem:[%s1124_s1 + $0x30] sm:$0xff]  ;;  %v829_v31 = vld [vmem:[%s1124_s1 + $0x28] sm:$0xff] }
   0xc   : > { %s822_s21 = sshll.u32 %s1130_s20, 4  ;;  %866 = vrcp.f32 %v892_v6  ;;  %v839_v28 = vld [vmem:[%s1124_s1 + $0x78] sm:$0xff]  ;;  %428 = vmatpush.bf16.msra.mxu0 %v831_v27  ;;  %v838_v30 = vld [vmem:[%s1124_s1 + $0x70] sm:$0xff]  ;;  %v837_v32 = vld [vmem:[%s1124_s1 + $0x68] sm:$0xff] }
   0xd   : > { %s224_s24 = scalar_lea.vmem %s1123_s0, %s822_s21  ;;  %442 = vmatpush.bf16.msra.mxu1 %v839_v28  ;;  %v828_v33 = vld [vmem:[%s1124_s1 + $0x20] sm:$0xff]  ;;  %v827_v35 = vld [vmem:[%s1124_s1 + $0x18] sm:$0xff]  ;;  %v826_v37 = vld [vmem:[%s1124_s1 + $0x10] sm:$0xff]  ;;  %s231_s14 = scalar_lea.vmem %s1128_s5, %s822_s21 }
   0xe   : > { %v233_v0 = vld [vmem:[%s224_s24] sm:$0xff]  ;;  %v234_v1 = vld [vmem:[%s224_s24 + $0x8] sm:$0xff]  ;;  %v235_v3 = vld [vmem:[%s224_s24 + $0x10] sm:$0xff] }
   0xf   : > { %v237_v2 = vadd.f32 %v234_v1, %v233_v0  ;;  %v236_v4 = vld [vmem:[%s224_s24 + $0x18] sm:$0xff]  ;;  %v836_v34 = vld [vmem:[%s1124_s1 + $0x60] sm:$0xff]  ;;  %v834_v38 = vld [vmem:[%s1124_s1 + $0x50] sm:$0xff] }
  0x10   : > { %v240_v5 = vadd.f32 %v236_v4, %v235_v3  ;;  %429 = vmatpush.bf16.msra.mxu0 %v830_v29  ;;  %v835_v36 = vld [vmem:[%s1124_s1 + $0x58] sm:$0xff]  ;;  %v825_v39 = vld [vmem:[%s1124_s1 + $0x8] sm:$0xff]  ;;  %v824_v41 = vld [vmem:[%s1124_s1] sm:$0xff] }
  0x11   : > { %238 = vadd.xlane.f32.xlu0 %v237_v2  ;;  %443 = vmatpush.bf16.msra.mxu1 %v838_v30  ;;  %v833_v40 = vld [vmem:[%s1124_s1 + $0x48] sm:$0xff]  ;;  %v832_v42 = vld [vmem:[%s1124_s1 + $0x40] sm:$0xff]  ;;  %v814_v46 = vld [vmem:[%s1126_s3 + $0x70] sm:$0xf] }
  0x12   : > { %v867_v7 = vpop.eup %866  ;;  %v855_v47 = vld [vmem:[%s1126_s3 + $0x74] sm:$0xf0]  ;;  %v854_v49 = vld [vmem:[%s1126_s3 + $0x74] sm:$0xf]  ;;  %v816_v50 = vld [vmem:[%s1126_s3 + $0x78] sm:$0xf0] }
  0x13   : > { %v244_v8 = vmul.f32 256.0, %v867_v7  ;;  %vm248_vm0 = vweird.f32 %v867_v7  ;;  %v815_v48 = vor.u32 %v855_v47, %v814_v46  ;;  %v806_v51 = vld [vmem:[%s1126_s3 + $0x60] sm:$0xf]  ;;  %v819_v52 = vor.u32 %v854_v49, %v816_v50  ;;  %v853_v53 = vld [vmem:[%s1126_s3 + $0x64] sm:$0xf0] }
  0x14   : > { %430 = vmatpush.bf16.msra.mxu0 %v829_v31  ;;  %v852_v54 = vld [vmem:[%s1126_s3 + $0x64] sm:$0xf]  ;;  %v808_v55 = vld [vmem:[%s1126_s3 + $0x68] sm:$0xf0]  ;;  %v807_v56 = vor.u32 %v853_v53, %v806_v51  ;;  %v798_v58 = vld [vmem:[%s1126_s3 + $0x50] sm:$0xf] }
  0x15   : > { %v245_v9 = vsub.f32 1.0, %v244_v8  ;;  %444 = vmatpush.bf16.msra.mxu1 %v837_v32  ;;  %561 = vmatpush.bf16.msra.mxu2 %v815_v48  ;;  %v811_v57 = vor.u32 %v852_v54, %v808_v55  ;;  %v851_v59 = vld [vmem:[%s1126_s3 + $0x54] sm:$0xf0]  ;;  %v850_v61 = vld [vmem:[%s1126_s3 + $0x54] sm:$0xf] }
  0x16   : > { %575 = vmatpush.bf16.msra.mxu3 %v819_v52  ;;  %v800_v62 = vld [vmem:[%s1126_s3 + $0x58] sm:$0xf0]  ;;  %v792_v8 = vld [vmem:[%s1126_s3 + $0x48] sm:$0xf0]  ;;  %v758_v47 = vld [vmem:[%s1126_s3] sm:$0xf] }
  0x17   : > { %v246_v10 = vmul.f32 %v867_v7, %v245_v9  ;;  %v841_v48 = vld [vmem:[%s1126_s3 + $0x4] sm:$0xf0]  ;;  %v840_v49 = vld [vmem:[%s1126_s3 + $0x4] sm:$0xf]  ;;  %v760_v51 = vld [vmem:[%s1126_s3 + $0x8] sm:$0xf0] }
  0x18   : > { %431 = vmatpush.bf16.msra.mxu0 %v828_v33  ;;  %v782_v33 = vld [vmem:[%s1126_s3 + $0x30] sm:$0xf]  ;;  %v759_v50 = vor.u32 %v841_v48, %v758_v47  ;;  %v763_v52 = vor.u32 %v840_v49, %v760_v51  ;;  %v865_v55 = vld [vmem:[%s1125_s2] ss:$0 sm:$0xff] }
  0x19   : > { %241 = vadd.xlane.f32.xlu0 %v240_v5  ;;  %v247_v11 = vadd.f32 %v867_v7, %v246_v10  ;;  %445 = vmatpush.bf16.msra.mxu1 %v836_v34  ;;  %v849_v5 = vld [vmem:[%s1126_s3 + $0x44] sm:$0xf0]  ;;  %v847_v34 = vld [vmem:[%s1126_s3 + $0x34] sm:$0xf0] }
  0x1a   : > { %562 = vmatpush.bf16.msra.mxu2 %v807_v56  ;;  %576 = vmatpush.bf16.msra.mxu3 %v811_v57 }
  0x1b   : > { %v939_v12 = vsel %vm248_vm0, %v867_v7, %v247_v11  ;;  %v848_v7 = vld [vmem:[%s1126_s3 + $0x44] sm:$0xf] }
  0x1c   : > { %432 = vmatpush.bf16.msra.mxu0 %v827_v35  ;;  %v795_v11 = vor.u32 %v848_v7, %v792_v8  ;;  %v774_v35 = vld [vmem:[%s1126_s3 + $0x20] sm:$0xf] }
  0x1d   : > { %446 = vmatpush.bf16.msra.mxu1 %v835_v36  ;;  %v845_v36 = vld [vmem:[%s1126_s3 + $0x24] sm:$0xf0] }
  0x20   : > { %433 = vmatpush.bf16.msra.mxu0 %v826_v37  ;;  %v844_v37 = vld [vmem:[%s1126_s3 + $0x24] sm:$0xf] }
  0x21   : > { %447 = vmatpush.bf16.msra.mxu1 %v834_v38  ;;  %v775_v38 = vor.u32 %v845_v36, %v774_v35 }
  0x24   : > { %434 = vmatpush.bf16.msra.mxu0 %v825_v39  ;;  %v776_v39 = vld [vmem:[%s1126_s3 + $0x28] sm:$0xf0] }
  0x25   : > { %448 = vmatpush.bf16.msra.mxu1 %v833_v40  ;;  %v779_v40 = vor.u32 %v844_v37, %v776_v39 }
  0x28   : > { %435 = vmatpush.bf16.msra.mxu0 %v824_v41  ;;  %v766_v41 = vld [vmem:[%s1126_s3 + $0x10] sm:$0xf] }
  0x29   : > { %449 = vmatpush.bf16.msra.mxu1 %v832_v42  ;;  %v843_v42 = vld [vmem:[%s1126_s3 + $0x14] sm:$0xf0] }
  0x84   : > { %v239_v13 = vpop.xlane.xlu0 %238 }
  0x85   : > { %v250_v14 = vmul.f32 %v939_v12, %v239_v13 }
  0x87   : > { %v942_v15 = vsub.f32 %v233_v0, %v250_v14  ;;  %v944_v16 = vsub.f32 %v234_v1, %v250_v14  ;;  %v799_v0 = vor.u32 %v851_v59, %v798_v58 }
  0x89   : > { %v256_v17 = vmul.f32 %v942_v15, %v942_v15  ;;  %v257_v18 = vmul.f32 %v944_v16, %v944_v16  ;;  %563 = vmatpush.bf16.msra.mxu2 %v799_v0 }
  0x8b   : > { %v260_v19 = vadd.f32 %v257_v18, %v256_v17 }
  0x8c   : > { %v242_v20 = vpop.xlane.xlu0 %241 }
  0x8d   : > { %v251_v21 = vmul.f32 %v939_v12, %v242_v20  ;;  %261 = vadd.xlane.f32.xlu1 %v260_v19 }
  0x8f   : > { %v951_v22 = vsub.f32 %v235_v3, %v251_v21  ;;  %v953_v23 = vsub.f32 %v236_v4, %v251_v21  ;;  %v803_v3 = vor.u32 %v850_v61, %v800_v62  ;;  %v790_v4 = vld [vmem:[%s1126_s3 + $0x40] sm:$0xf] }
  0x90   : > { %v791_v10 = vor.u32 %v849_v5, %v790_v4 }
  0x91   : > { %v258_v24 = vmul.f32 %v951_v22, %v951_v22  ;;  %v259_v25 = vmul.f32 %v953_v23, %v953_v23  ;;  %577 = vmatpush.bf16.msra.mxu3 %v803_v3 }
  0x92   : > { %564 = vmatpush.bf16.msra.mxu2 %v791_v10 }
  0x93   : > { %v263_v26 = vadd.f32 %v259_v25, %v258_v24 }
  0x95   : > { %264 = vadd.xlane.f32.xlu1 %v263_v26  ;;  %578 = vmatpush.bf16.msra.mxu3 %v795_v11 }
 0x100   : > { %v262_v43 = vpop.xlane.xlu1 %261 }
 0x101   : > { %v266_v44 = vmul.f32 %v262_v43, %v939_v12  ;;  %v842_v43 = vld [vmem:[%s1126_s3 + $0x14] sm:$0xf] }
 0x103   : > { %v268_v45 = vadd.f32 1e-10, %v266_v44  ;;  %v767_v44 = vor.u32 %v843_v42, %v766_v41 }
 0x105   : > { %868 = vrsqrt.f32 %v268_v45  ;;  %vm276_vm2 = vweird.f32 %v268_v45 }
 0x108   : > { %v265_v60 = vpop.xlane.xlu1 %264 }
 0x109   : > { %v267_v63 = vmul.f32 %v265_v60, %v939_v12 }
 0x10b   : > { %v869_v1 = vpop.eup %868  ;;  %v269_v2 = vadd.f32 1e-10, %v267_v63 }
 0x10c   : > { %v271_v6 = vmul.f32 %v869_v1, %v268_v45  ;;  %vm277_vm1 = vweird.f32 %v869_v1  ;;  %v768_v45 = vld [vmem:[%s1126_s3 + $0x18] sm:$0xf0] }
 0x10d   : > { %870 = vrsqrt.f32 %v269_v2  ;;  %vm278_vm4 = vmor %vm276_vm2, %vm277_vm1  ;;  %vm286_vm5 = vweird.f32 %v269_v2  ;;  %v771_v46 = vor.u32 %v842_v43, %v768_v45 }
 0x10e   : > { %v272_v9 = vmul.f32 %v869_v1, %v271_v6 }
 0x110   : > { %v273_v12 = vmul.f32 0.5, %v272_v9 }
 0x112   : > { %v274_v14 = vsub.f32 1.5, %v273_v12 }
 0x113   : > { %v871_v13 = vpop.eup %870 }
 0x114   : > { %v281_v17 = vmul.f32 %v871_v13, %v269_v2  ;;  %v275_v20 = vmul.f32 %v869_v1, %v274_v14  ;;  %vm287_vm3 = vweird.f32 %v871_v13 }
 0x115   : > { %vm288_vm6 = vmor %vm286_vm5, %vm287_vm3 }
 0x116   : > { %v282_v18 = vmul.f32 %v871_v13, %v281_v17  ;;  %v279_v24 = vsel %vm278_vm4, %v869_v1, %v275_v20  ;;  %v475_v1 = vld [vmem:[%s1127_s4] sm:$0x3] }
 0x117   : > { %v290_v27 = vmul.f32 %v279_v24, %v942_v15  ;;  %v291_v29 = vmul.f32 %v279_v24, %v944_v16  ;;  %v846_v15 = vld [vmem:[%s1126_s3 + $0x34] sm:$0xf]  ;;  %v784_v16 = vld [vmem:[%s1126_s3 + $0x38] sm:$0xf0]  ;;  %v477_v2 = vperm.slane %v475_v1, 0  ;;  %v478_v3 = vperm.slane %v475_v1, 1 }
 0x118   : > { %v283_v19 = vmul.f32 0.5, %v282_v18 }
 0x11a   : > { %v284_v21 = vsub.f32 1.5, %v283_v19 }
 0x11c   : > { %v285_v25 = vmul.f32 %v871_v13, %v284_v21 }
 0x11e   : > { %v289_v26 = vsel %vm288_vm6, %v871_v13, %v285_v25 }
 0x11f   : > { %v292_v28 = vmul.f32 %v289_v26, %v951_v22  ;;  %v293_v30 = vmul.f32 %v289_v26, %v953_v23  ;;  %v783_v22 = vor.u32 %v847_v34, %v782_v33  ;;  %v787_v23 = vor.u32 %v846_v15, %v784_v16 }
 0x121   : > { %v294_v31 = vpack.c.bf16 %v292_v28, %v290_v27  ;;  %v295_v32 = vpack.c.bf16 %v293_v30, %v291_v29  ;;  %565 = vmatpush.bf16.msra.mxu2 %v783_v22  ;;  %579 = vmatpush.bf16.msra.mxu3 %v787_v23 }
 0x123   : > { %436 = vmatmul.bf16.vlgmr.msra.gmra.mxu0 %v294_v31  ;;  %450 = vmatmul.bf16.vlgmr.msra.gmra.mxu1 %v295_v32 }
 0x125   : > { %566 = vmatpush.bf16.msra.mxu2 %v775_v38  ;;  %580 = vmatpush.bf16.msra.mxu3 %v779_v40 }
 0x129   : > { %567 = vmatpush.bf16.msra.mxu2 %v767_v44  ;;  %581 = vmatpush.bf16.msra.mxu3 %v771_v46 }
 0x12d   : > { %568 = vmatpush.bf16.msra.mxu2 %v759_v50  ;;  %582 = vmatpush.bf16.msra.mxu3 %v763_v52 }
 0x1a0   : > { %v437_v53 = vpop.f32.mrf.mxu0  ;;  %v451_v54 = vpop.f32.mrf.mxu1 }
 0x1a1   : > { %v438_v56 = vadd.f32 %v865_v55, %v437_v53 }
 0x1a3   : > { %v452_v58 = vadd.f32 %v451_v54, %v438_v56 }
 0x1a5   : > { %v456_v62 = vmax.f32 %v452_v58, 0.0 }
 0x1a8   : > { %v439_v57 = vpop.f32.mrf.mxu0  ;;  %v453_v60 = vpop.f32.mrf.mxu1 }
 0x1a9   : > { %v440_v59 = vadd.f32 %v865_v55, %v439_v57 }
 0x1ab   : > { %v454_v61 = vadd.f32 %v453_v60, %v440_v59 }
 0x1ad   : > { %v457_v63 = vmax.f32 %v454_v61, 0.0 }
 0x1af   : > { %v458_v0 = vpack.c.bf16 %v457_v63, %v456_v62 }
 0x1b1   : > { %569 = vmatmul.bf16.vlgmr.msra.gmra.mxu2 %v458_v0  ;;  %583 = vmatmul.bf16.vlgmr.msra.gmra.mxu3 %v458_v0 }
 0x234   : > { %v570_v4 = vpop.f32.mrf.mxu2  ;;  %v584_v5 = vpop.f32.mrf.mxu3 }
 0x235   : > { %v571_v6 = vadd.f32 %v570_v4, %v477_v2  ;;  %v585_v7 = vadd.f32 %v584_v5, %v478_v3 }
 0x237   : > { %v589_v8 = vmax.f32 %v571_v6, %v585_v7 }
 0x239   : > { %590 = vmax.xlane.f32.xlu2 %v589_v8 }
 0x23c   : > { %v572_v9 = vpop.f32.mrf.mxu2  ;;  %v586_v10 = vpop.f32.mrf.mxu3 }
 0x23d   : > { %v573_v11 = vadd.f32 %v572_v9, %v477_v2  ;;  %v587_v12 = vadd.f32 %v586_v10, %v478_v3 }
 0x23f   : > { %v592_v13 = vmax.f32 %v573_v11, %v587_v12 }
 0x241   : > { %593 = vmax.xlane.f32.xlu2 %v592_v13 }
 0x2ac   : > { %v591_v14 = vpop.xlane.xlu2 %590 }
 0x2ad   : > { %v595_v17 = vsub.f32 %v571_v6, %v591_v14  ;;  %v596_v18 = vsub.f32 %v585_v7, %v591_v14 }
 0x2af   : > { %v599_v19 = vmul.f32 1.442695, %v595_v17  ;;  %v601_v20 = vmul.f32 1.442695, %v596_v18 }
 0x2b1   : > { %872 = vpow2.f32 %v599_v19 }
 0x2b2   : > { %874 = vpow2.f32 %v601_v20 }
 0x2b4   : > { %v594_v21 = vpop.xlane.xlu2 %593 }
 0x2b5   : > { %v597_v24 = vsub.f32 %v573_v11, %v594_v21  ;;  %v598_v25 = vsub.f32 %v587_v12, %v594_v21 }
 0x2b7   : > { %v873_v26 = vpop.eup %872  ;;  %v603_v27 = vmul.f32 1.442695, %v597_v24  ;;  %v605_v28 = vmul.f32 1.442695, %v598_v25 }
 0x2b8   : > { %v875_v29 = vpop.eup %874 }
 0x2b9   : > { %876 = vpow2.f32 %v603_v27  ;;  %v607_v30 = vadd.f32 %v875_v29, %v873_v26 }
 0x2ba   : > { %878 = vpow2.f32 %v605_v28 }
 0x2bb   : > { %608 = vadd.xlane.f32.xlu0 %v607_v30 }
 0x2bf   : > { %v877_v31 = vpop.eup %876 }
 0x2c0   : > { %v879_v32 = vpop.eup %878 }
 0x2c1   : > { %v610_v33 = vadd.f32 %v879_v32, %v877_v31 }
 0x2c3   : > { %611 = vadd.xlane.f32.xlu1 %v610_v33 }
 0x32e   : > { %v609_v34 = vpop.xlane.xlu0 %608 }
 0x32f   : > { %880 = vrcp.f32 %v609_v34 }
 0x335   : > { %v881_v15 = vpop.eup %880 }
 0x336   : > { %v615_v22 = vmul.f32 %v881_v15, %v873_v26  ;;  %v616_v16 = vmul.f32 %v881_v15, %v875_v29  ;;  %v612_v23 = vpop.xlane.xlu1 %611 }
 0x337   : > { %882 = vrcp.f32 %v612_v23 }
 0x338   : > { %619 = vst [vmem:[%s231_s14] sm:$0xff] %v615_v22 }
 0x339   : > { %620 = vst [vmem:[%s231_s14 + $0x8] sm:$0xff] %v616_v16 }
 0x33d   : > { %v883_v35 = vpop.eup %882 }
 0x33e   : > { %v617_v36 = vmul.f32 %v883_v35, %v877_v31  ;;  %v618_v37 = vmul.f32 %v883_v35, %v879_v32 }
 0x340   : > { %621 = vst [vmem:[%s231_s14 + $0x10] sm:$0xff] %v617_v36 }
 0x341   : > { %622 = vst [vmem:[%s231_s14 + $0x18] sm:$0xff] %v618_v37 }
 0x342 PF: > { %s15_s18 = sadd.s32 1, %s890_s18  }
 0x343   : > { %p12_p4 = scmp.ge.s32.totalorder %s15_s18, 4  }
 0x345   :  { %14 = sbr.rel (!%p12_p4) target bundleno = 1 (0x1), region = 70 }

</bundles_post_ra>
